<compile_context>
chip_gen: v7x
topology: tpu7x:2x2x1
jax: 0.10.0
libtpu: 0.0.40
codegen_flags: <defaults>
</compile_context>

<pallas_src>
import functools
import math

import jax
import jax.numpy as jnp
from jax import lax
from jax.experimental import pallas as pl
from jax.experimental.pallas import tpu as pltpu


# Large finite negative used instead of -inf so masked scores never turn into NaN
# inside the online softmax (exp underflows to 0 instead).
_MASK_VALUE = -0.7 * float(jnp.finfo(jnp.float32).max)


def _sdpa_flash_kernel(q_ref, k_ref, v_ref, mask_ref, o_ref,
                       m_sc, l_sc, acc_sc, *, inv_temper):
    """One (batch, q-tile, kv-tile) grid step of flash-style attention."""
    j = pl.program_id(2)

    @pl.when(j == 0)
    def _init():
        m_sc[...] = jnp.full_like(m_sc, _MASK_VALUE)
        l_sc[...] = jnp.zeros_like(l_sc)
        acc_sc[...] = jnp.zeros_like(acc_sc)

    q = q_ref[...]                        # (tq, Dk), kept in input dtype (no f32 upcast)
    k = k_ref[...]                        # (tk, Dk)
    masked = mask_ref[...] != 0           # (tq, tk) bool, True == masked out

    # scores = (q @ k^T) / temper  -- contract Dk with Dk directly (no k.T relayout),
    # MXU matmul with f32 accumulation.
    s = lax.dot_general(
        q, k, (((1,), (1,)), ((), ())),
        preferred_element_type=jnp.float32,
    ) * inv_temper                        # (tq, tk) f32
    s = jnp.where(masked, _MASK_VALUE, s)

    # Online softmax update.
    m_prev = m_sc[...]                                   # (tq, 1)
    m_curr = jnp.max(s, axis=-1, keepdims=True)
    m_next = jnp.maximum(m_prev, m_curr)

    alpha = jnp.exp(m_prev - m_next)                     # rescale of running stats
    p = jnp.exp(s - m_next)
    p = jnp.where(masked, 0.0, p)                        # exact masked_fill(-inf) semantics

    l_sc[...] = alpha * l_sc[...] + jnp.sum(p, axis=-1, keepdims=True)
    acc_sc[...] = alpha * acc_sc[...] + lax.dot_general(
        p.astype(v_ref.dtype), v_ref[...],               # probs in v's dtype for the MXU
        (((1,), (0,)), ((), ())),
        preferred_element_type=jnp.float32,
    )
    m_sc[...] = m_next

    @pl.when(j == pl.num_programs(2) - 1)
    def _finalize():
        l = l_sc[...]
        # Fully-masked rows have l == 0; emit 0 rather than NaN.
        safe_l = jnp.where(l == 0.0, 1.0, l)
        o_ref[...] = (acc_sc[...] * pl.reciprocal(safe_l, approx=False)).astype(
            o_ref.dtype)


def _choose_block(dim, candidates):
    """Largest candidate evenly dividing `dim`, else the full extent (always legal)."""
    for c in candidates:
        if dim % c == 0:
            return c
    return dim


def scaled_dot_product_attention(q, k, v, attn_mask, *, d_k=None,
                                 block_q=None, block_k=None):
    """q: (B, Lq, Dk), k: (B, Lk, Dk), v: (B, Lk, Dv), attn_mask: (B, Lq, Lk) bool."""
    B, Lq, Dk = q.shape
    _, Lk, _ = k.shape
    Dv = v.shape[-1]
    if d_k is None:
        d_k = Dk
    inv_temper = 1.0 / math.sqrt(float(d_k))

    # tq is a sublane dim everywhere -> multiple of 8 (or full extent);
    # tk is the lane dim of the mask tile -> multiple of 128 (or full extent).
    # Modest tiles keep total resident VMEM far below the 32 MiB scoped limit
    # (and v7x's 64 MiB physical) while restoring double-buffered pipelining.
    if block_q is None:
        block_q = _choose_block(Lq, (256, 128, 64, 32, 16, 8))
    if block_k is None:
        block_k = _choose_block(Lk, (512, 256, 128))
    tq, tk = block_q, block_k
    assert Lq % tq == 0 and Lk % tk == 0

    mask_i8 = attn_mask.astype(jnp.int8)   # 4x less mask HBM traffic than int32

    kernel = functools.partial(_sdpa_flash_kernel, inv_temper=inv_temper)

    grid_spec = pltpu.PrefetchScalarGridSpec(
        num_scalar_prefetch=0,
        grid=(B, Lq // tq, Lk // tk),
        in_specs=[
            pl.BlockSpec((None, tq, Dk), lambda b, i, j: (b, i, 0)),   # q
            pl.BlockSpec((None, tk, Dk), lambda b, i, j: (b, j, 0)),   # k
            pl.BlockSpec((None, tk, Dv), lambda b, i, j: (b, j, 0)),   # v
            pl.BlockSpec((None, tq, tk), lambda b, i, j: (b, i, j)),   # mask (int8)
        ],
        out_specs=pl.BlockSpec((None, tq, Dv), lambda b, i, j: (b, i, 0)),
        scratch_shapes=[
            pltpu.VMEM((tq, 1), jnp.float32),    # running max   m_i
            pltpu.VMEM((tq, 1), jnp.float32),    # running denom l_i
            pltpu.VMEM((tq, Dv), jnp.float32),   # running output accumulator
        ],
    )

    return pl.pallas_call(
        kernel,
        out_shape=jax.ShapeDtypeStruct((B, Lq, Dv), q.dtype),
        grid_spec=grid_spec,
        compiler_params=pltpu.CompilerParams(
            dimension_semantics=("parallel", "parallel", "arbitrary"),
            vmem_limit_bytes=32 * 1024 * 1024,
        ),
    )(q, k, v, mask_i8)


def _reference(q, k, v, attn_mask, d_k):
    scores = jnp.einsum("bqd,bkd->bqk",
                        q.astype(jnp.float32), k.astype(jnp.float32))
    scores = scores / math.sqrt(float(d_k))
    scores = jnp.where(attn_mask, -jnp.inf, scores)
    attn = jax.nn.softmax(scores, axis=-1)
    return jnp.einsum("bqk,bkd->bqd", attn, v.astype(jnp.float32)).astype(q.dtype)


if __name__ == "__main__":
    key = jax.random.PRNGKey(0)

    def _run_case(B, Lq, Lk, Dk, Dv, block_q=None, block_k=None):
        kq, kk, kv = jax.random.split(jax.random.fold_in(key, Lq * 131 + Lk), 3)
        q = jax.random.normal(kq, (B, Lq, Dk), dtype=jnp.float32)
        k = jax.random.normal(kk, (B, Lk, Dk), dtype=jnp.float32)
        v = jax.random.normal(kv, (B, Lk, Dv), dtype=jnp.float32)

        # Causal-style mask (True == masked out); each row keeps >=1 unmasked entry
        # so the softmax is well-defined (typical usage of this module).
        row = jnp.arange(Lq)[:, None]
        col = jnp.arange(Lk)[None, :]
        attn_mask = jnp.broadcast_to(col > row, (B, Lq, Lk))

        out = scaled_dot_product_attention(q, k, v, attn_mask, d_k=Dk,
                                           block_q=block_q, block_k=block_k)
        out = jax.block_until_ready(out)
        ref = _reference(q, k, v, attn_mask, Dk)
        assert out.shape == (B, Lq, Dv)
        assert jnp.allclose(out, ref, atol=1e-4, rtol=1e-4), (
            f"mismatch vs reference for shape {(B, Lq, Lk, Dk, Dv)}")

    # Small shape consistent with the module (single block per batch element).
    _run_case(B=2, Lq=8, Lk=8, Dk=32, Dv=32)
    # Multi-tile case exercising online softmax across several q/kv tiles
    # (including fully-masked kv tiles from the causal mask).
    _run_case(B=2, Lq=256, Lk=256, Dk=64, Dv=64, block_q=128, block_k=128)

    print("KERNEL_OK")
</pallas_src>

<mosaic_0001>
module attributes {stable_mosaic.version = 11 : i64} {
  func.func @_sdpa_flash_kernel(%arg0: i32, %arg1: i32, %arg2: i32, %arg3: memref<1x8x32xf32, #tpu.memory_space<vmem>>, %arg4: memref<1x8x32xf32, #tpu.memory_space<vmem>>, %arg5: memref<1x8x32xf32, #tpu.memory_space<vmem>>, %arg6: memref<1x8x8xi8, #tpu.memory_space<vmem>>, %arg7: memref<1x8x32xf32, #tpu.memory_space<vmem>>, %arg8: memref<8x1xf32, #tpu.memory_space<vmem>>, %arg9: memref<8x1xf32, #tpu.memory_space<vmem>>, %arg10: memref<8x32xf32, #tpu.memory_space<vmem>>) attributes {dimension_semantics = [#tpu.dimension_semantics<parallel>, #tpu.dimension_semantics<parallel>, #tpu.dimension_semantics<arbitrary>], iteration_bounds = array<i64: 2, 1, 1>, scalar_prefetch = 0 : i64, scratch_operands = 3 : i64, tpu.core_type = #tpu.core_type<tc>, window_params = [{transform_indices = @transform_0, window_bounds = array<i64: 1, 8, 32>}, {transform_indices = @transform_1, window_bounds = array<i64: 1, 8, 32>}, {transform_indices = @transform_2, window_bounds = array<i64: 1, 8, 32>}, {transform_indices = @transform_3, window_bounds = array<i64: 1, 8, 8>}, {transform_indices = @transform_4, window_bounds = array<i64: 1, 8, 32>}]} {
    %c0_i32 = arith.constant 0 : i32
    %0 = arith.cmpi eq, %arg2, %c0_i32 : i32
    %1 = arith.extui %0 : i1 to i32
    %c0_i32_0 = arith.constant 0 : i32
    %2 = arith.cmpi ne, %1, %c0_i32_0 : i32
    scf.if %2 {
      %cst_32 = arith.constant -2.38197633E+38 : f32
      %45 = vector.broadcast %cst_32 : f32 to vector<8x1xf32>
      %c0_33 = arith.constant 0 : index
      %c0_34 = arith.constant 0 : index
      %46 = vector.load %arg8[%c0_33, %c0_34] : memref<8x1xf32, #tpu.memory_space<vmem>>, vector<8x1xf32>
      tpu.vector_store %arg8[%c0_33, %c0_34], %45 {strides = array<i32>} : memref<8x1xf32, #tpu.memory_space<vmem>>, vector<8x1xf32>,
      %cst_35 = arith.constant 0.000000e+00 : f32
      %47 = vector.broadcast %cst_35 : f32 to vector<8x1xf32>
      %c0_36 = arith.constant 0 : index
      %c0_37 = arith.constant 0 : index
      %48 = vector.load %arg9[%c0_36, %c0_37] : memref<8x1xf32, #tpu.memory_space<vmem>>, vector<8x1xf32>
      tpu.vector_store %arg9[%c0_36, %c0_37], %47 {strides = array<i32>} : memref<8x1xf32, #tpu.memory_space<vmem>>, vector<8x1xf32>,
      %cst_38 = arith.constant 0.000000e+00 : f32
      %49 = vector.broadcast %cst_38 : f32 to vector<8x32xf32>
      %c0_39 = arith.constant 0 : index
      %c0_40 = arith.constant 0 : index
      %50 = vector.load %arg10[%c0_39, %c0_40] : memref<8x32xf32, #tpu.memory_space<vmem>>, vector<8x32xf32>
      tpu.vector_store %arg10[%c0_39, %c0_40], %49 {strides = array<i32>} : memref<8x32xf32, #tpu.memory_space<vmem>>, vector<8x32xf32>,
    } else {
    }
    %c0 = arith.constant 0 : index
    %c0_1 = arith.constant 0 : index
    %c0_2 = arith.constant 0 : index
    %3 = vector.load %arg3[%c0, %c0_1, %c0_2] : memref<1x8x32xf32, #tpu.memory_space<vmem>>, vector<1x8x32xf32>
    %4 = vector.shape_cast %3 : vector<1x8x32xf32> to vector<8x32xf32>
    %c0_3 = arith.constant 0 : index
    %c0_4 = arith.constant 0 : index
    %c0_5 = arith.constant 0 : index
    %5 = vector.load %arg4[%c0_3, %c0_4, %c0_5] : memref<1x8x32xf32, #tpu.memory_space<vmem>>, vector<1x8x32xf32>
    %6 = vector.shape_cast %5 : vector<1x8x32xf32> to vector<8x32xf32>
    %c0_6 = arith.constant 0 : index
    %c0_7 = arith.constant 0 : index
    %c0_8 = arith.constant 0 : index
    %7 = vector.load %arg6[%c0_6, %c0_7, %c0_8] : memref<1x8x8xi8, #tpu.memory_space<vmem>>, vector<1x8x8xi8>
    %8 = vector.shape_cast %7 : vector<1x8x8xi8> to vector<8x8xi8>
    %c0_i8 = arith.constant 0 : i8
    %9 = vector.broadcast %c0_i8 : i8 to vector<8x8xi8>
    %10 = arith.cmpi ne, %8, %9 : vector<8x8xi8>
    %cst = arith.constant dense<0.000000e+00> : vector<8x8xf32>
    %11 = tpu.matmul %4, %6, %cst {dimension_numbers = #tpu.dot_dimension_numbers<[1], [1], [0], [0], [0, 0, 1, 0], [], []>} : vector<8x32xf32>, vector<8x32xf32>, vector<8x8xf32> -> vector<8x8xf32>
    %cst_9 = arith.constant 0.176776692 : f32
    %12 = vector.broadcast %cst_9 : f32 to vector<8x8xf32>
    %13 = arith.mulf %11, %12 : vector<8x8xf32>
    %cst_10 = arith.constant -2.38197633E+38 : f32
    %14 = vector.broadcast %cst_10 : f32 to vector<8x8xf32>
    %15 = arith.select %10, %14, %13 : vector<8x8xi1>, vector<8x8xf32>
    %c0_11 = arith.constant 0 : index
    %c0_12 = arith.constant 0 : index
    %16 = vector.load %arg8[%c0_11, %c0_12] : memref<8x1xf32, #tpu.memory_space<vmem>>, vector<8x1xf32>
    %cst_13 = arith.constant dense<0xFF800000> : vector<8xf32>
    %17 = vector.multi_reduction <maximumf>, %15, %cst_13 [1] : vector<8x8xf32> to vector<8xf32>
    %18 = vector.shape_cast %17 : vector<8xf32> to vector<8x1xf32>
    %19 = arith.maximumf %16, %18 : vector<8x1xf32>
    %20 = arith.subf %16, %19 : vector<8x1xf32>
    %21 = math.exp %20 : vector<8x1xf32>
    %22 = vector.broadcast %19 : vector<8x1xf32> to vector<8x8xf32>
    %23 = arith.subf %15, %22 : vector<8x8xf32>
    %24 = math.exp %23 : vector<8x8xf32>
    %cst_14 = arith.constant 0.000000e+00 : f32
    %25 = vector.broadcast %cst_14 : f32 to vector<8x8xf32>
    %26 = arith.select %10, %25, %24 : vector<8x8xi1>, vector<8x8xf32>
    %c0_15 = arith.constant 0 : index
    %c0_16 = arith.constant 0 : index
    %27 = vector.load %arg9[%c0_15, %c0_16] : memref<8x1xf32, #tpu.memory_space<vmem>>, vector<8x1xf32>
    %28 = arith.mulf %21, %27 : vector<8x1xf32>
    %cst_17 = arith.constant dense<0.000000e+00> : vector<8xf32>
    %29 = vector.multi_reduction <add>, %26, %cst_17 [1] : vector<8x8xf32> to vector<8xf32>
    %30 = vector.shape_cast %29 : vector<8xf32> to vector<8x1xf32>
    %31 = arith.addf %28, %30 : vector<8x1xf32>
    %c0_18 = arith.constant 0 : index
    %c0_19 = arith.constant 0 : index
    %32 = vector.load %arg9[%c0_18, %c0_19] : memref<8x1xf32, #tpu.memory_space<vmem>>, vector<8x1xf32>
    tpu.vector_store %arg9[%c0_18, %c0_19], %31 {strides = array<i32>} : memref<8x1xf32, #tpu.memory_space<vmem>>, vector<8x1xf32>,
    %c0_20 = arith.constant 0 : index
    %c0_21 = arith.constant 0 : index
    %33 = vector.load %arg10[%c0_20, %c0_21] : memref<8x32xf32, #tpu.memory_space<vmem>>, vector<8x32xf32>
    %34 = vector.broadcast %21 : vector<8x1xf32> to vector<8x32xf32>
    %35 = arith.mulf %34, %33 : vector<8x32xf32>
    %c0_22 = arith.constant 0 : index
    %c0_23 = arith.constant 0 : index
    %c0_24 = arith.constant 0 : index
    %36 = vector.load %arg5[%c0_22, %c0_23, %c0_24] : memref<1x8x32xf32, #tpu.memory_space<vmem>>, vector<1x8x32xf32>
    %37 = vector.shape_cast %36 : vector<1x8x32xf32> to vector<8x32xf32>
    %cst_25 = arith.constant dense<0.000000e+00> : vector<8x32xf32>
    %38 = tpu.matmul %26, %37, %cst_25 {dimension_numbers = #tpu.dot_dimension_numbers<[1], [0], [0], [1], [0, 0, 1, 1], [], []>} : vector<8x8xf32>, vector<8x32xf32>, vector<8x32xf32> -> vector<8x32xf32>
    %39 = arith.addf %35, %38 : vector<8x32xf32>
    %c0_26 = arith.constant 0 : index
    %c0_27 = arith.constant 0 : index
    %40 = vector.load %arg10[%c0_26, %c0_27] : memref<8x32xf32, #tpu.memory_space<vmem>>, vector<8x32xf32>
    tpu.vector_store %arg10[%c0_26, %c0_27], %39 {strides = array<i32>} : memref<8x32xf32, #tpu.memory_space<vmem>>, vector<8x32xf32>,
    %c0_28 = arith.constant 0 : index
    %c0_29 = arith.constant 0 : index
    %41 = vector.load %arg8[%c0_28, %c0_29] : memref<8x1xf32, #tpu.memory_space<vmem>>, vector<8x1xf32>
    tpu.vector_store %arg8[%c0_28, %c0_29], %19 {strides = array<i32>} : memref<8x1xf32, #tpu.memory_space<vmem>>, vector<8x1xf32>,
    %c0_i32_30 = arith.constant 0 : i32
    %42 = arith.cmpi eq, %arg2, %c0_i32_30 : i32
    %43 = arith.extui %42 : i1 to i32
    %c0_i32_31 = arith.constant 0 : i32
    %44 = arith.cmpi ne, %43, %c0_i32_31 : i32
    scf.if %44 {
      %c0_32 = arith.constant 0 : index
      %c0_33 = arith.constant 0 : index
      %45 = vector.load %arg9[%c0_32, %c0_33] : memref<8x1xf32, #tpu.memory_space<vmem>>, vector<8x1xf32>
      %cst_34 = arith.constant 0.000000e+00 : f32
      %46 = vector.broadcast %cst_34 : f32 to vector<8x1xf32>
      %47 = arith.cmpf oeq, %45, %46 : vector<8x1xf32>
      %cst_35 = arith.constant 1.000000e+00 : f32
      %48 = vector.broadcast %cst_35 : f32 to vector<8x1xf32>
      %49 = arith.select %47, %48, %45 : vector<8x1xi1>, vector<8x1xf32>
      %c0_36 = arith.constant 0 : index
      %c0_37 = arith.constant 0 : index
      %50 = vector.load %arg10[%c0_36, %c0_37] : memref<8x32xf32, #tpu.memory_space<vmem>>, vector<8x32xf32>
      %51 = tpu.reciprocal %49 : vector<8x1xf32> -> vector<8x1xf32>
      %52 = vector.broadcast %51 : vector<8x1xf32> to vector<8x32xf32>
      %53 = arith.mulf %50, %52 : vector<8x32xf32>
      %c0_38 = arith.constant 0 : index
      %c0_39 = arith.constant 0 : index
      %c0_40 = arith.constant 0 : index
      %54 = vector.load %arg7[%c0_38, %c0_39, %c0_40] : memref<1x8x32xf32, #tpu.memory_space<vmem>>, vector<1x8x32xf32>
      %55 = vector.shape_cast %54 : vector<1x8x32xf32> to vector<8x32xf32>
      %56 = vector.shape_cast %53 : vector<8x32xf32> to vector<1x8x32xf32>
      tpu.vector_store %arg7[%c0_38, %c0_39, %c0_40], %56 {strides = array<i32>} : memref<1x8x32xf32, #tpu.memory_space<vmem>>, vector<1x8x32xf32>,
    } else {
    }
    return
  }
  func.func @transform_0(%arg0: i32, %arg1: i32, %arg2: i32) -> (i32, i32, i32) {
    %c0_i32 = arith.constant 0 : i32
    %c0_i32_0 = arith.constant 0 : i32
    return %arg0, %arg1, %c0_i32 : i32, i32, i32
  }
  func.func @transform_1(%arg0: i32, %arg1: i32, %arg2: i32) -> (i32, i32, i32) {
    %c0_i32 = arith.constant 0 : i32
    %c0_i32_0 = arith.constant 0 : i32
    return %arg0, %arg2, %c0_i32 : i32, i32, i32
  }
  func.func @transform_2(%arg0: i32, %arg1: i32, %arg2: i32) -> (i32, i32, i32) {
    %c0_i32 = arith.constant 0 : i32
    %c0_i32_0 = arith.constant 0 : i32
    return %arg0, %arg2, %c0_i32 : i32, i32, i32
  }
  func.func @transform_3(%arg0: i32, %arg1: i32, %arg2: i32) -> (i32, i32, i32) {
    %c0_i32 = arith.constant 0 : i32
    return %arg0, %arg1, %arg2 : i32, i32, i32
  }
  func.func @transform_4(%arg0: i32, %arg1: i32, %arg2: i32) -> (i32, i32, i32) {
    %c0_i32 = arith.constant 0 : i32
    %c0_i32_0 = arith.constant 0 : i32
    return %arg0, %arg1, %c0_i32 : i32, i32, i32
  }
}

</mosaic_0001>

<bundles_post_ra>
// kernel: tpu_custom_call.1
= control target key start
LH: loop header
LB: loop body
LE: loop exit
PB: predicated region body
PF: predicated region fallthrough
CT: control target
= control target key end

     0   :  { %s1357_s0 = inlined_call_operand.hbm [shape: f32[2,8,32], index: 0, kind: input, shape index: {}]   ;;  %s1358_s1 = inlined_call_operand.hbm [shape: f32[2,8,32], index: 1, kind: input, shape index: {}]   ;;  %s1359_s2 = inlined_call_operand.hbm [shape: f32[2,8,32], index: 2, kind: input, shape index: {}]   ;;  %s1360_s3 = inlined_call_operand.vmem [shape: s8[2,8,8], index: 3, kind: input, shape index: {}]   ;;  %s1361_s4 = inlined_call_operand.hbm [shape: f32[2,8,32], index: 4, kind: output, shape index: {}]  }
   0x1   :  { %1370 = sst [smem:[#allocation19_spill]] %s1358_s1 }
   0x2   :  { %9 = vsyncpa [#allocation6], 0 }
   0x3   :  { %11 = vsyncpa [#allocation6 + $0x1], 0 }
   0x4   :  { %12 = vsyncpa [#allocation9], 0 }
   0x5   :  { %14 = vsyncpa [#allocation9 + $0x1], 0 }
   0x6   :  { %15 = vsyncpa [#allocation7], 0 }
   0x7   :  { %17 = vsyncpa [#allocation7 + $0x1], 0  ;;  %s1068_s15 = smov 0   ;;  %s1070_s16 = smov 0  }
   0x8   :  { %s1072_s17 = smov 0   ;;  %s1074_s18 = smov 0  }
   0x9   :  { %s1076_s19 = smov 0   ;;  %s1078_s20 = smov 0  }
   0xa LB: > { %1371 = sst [smem:[#allocation15_spill]] %s1029_s19  ;;  %s1099_s21 = sadd.s32 4294967295, %s1033_s20   ;;  %s1033_s20 = sphi %s1078_s20, %s23_s20   ;;  %s1029_s19 = sphi %s1076_s19, %s1397_s19   ;;  %s1025_s18 = sphi %s1074_s18, %s1396_s18   ;;  %s1021_s17 = sphi %s1072_s17, %s1400_s17   ;;  %s1017_s16 = sphi %s1070_s16, %s1399_s16   ;;  %s1013_s15 = sphi %s1068_s15, %s1398_s15  }
   0xb   : > { %1372 = sst [smem:[#allocation16_spill]] %s1033_s20  ;;  %s737_s22 = sadd.s32 4294967294, %s1033_s20  }
   0xc   : > { %s42_s23 = sadd.s32 1, %s1029_s19  ;;  %s51_s24 = sadd.s32 1, %s1021_s17 }
   0xd   : > { %p44_p0 = scmp.ge.s32.totalorder %s42_s23, 2  ;;  %p58_p1 = scmp.ne.s32.totalorder %s1021_s17, %s1017_s16 }
   0xe   : > { %p59_p2 = scmp.eq.s32.totalorder %s1033_s20, 0  ;;  %p64_p3 = scmp.ne.s32.totalorder %s1017_s16, %s1013_s15 }
   0xf   : > { %s1402_s23 = smov (%p44_p0, %s42_s23), 0  ;;  %p65_p5 = scmp.eq.s32.totalorder %s1099_s21, 0 }
  0x10   : > { %1373 = sst [smem:[#allocation17_spill]] %s1402_s23  ;;  %p1111_p4 = por %p59_p2, %p58_p1 }
  0x11   : > { %s46_s26 = ssub.s32 %s1029_s19, %s1402_s23  ;;  %p176_p6 = scmp.eq.s32.totalorder %s1099_s21, 1 }
  0x12   : > { %p49_p7 = scmp.eq.s32.totalorder %s46_s26, 0  ;;  %p1119_p8 = por %p65_p5, %p64_p3 }
  0x13   : > { %p1123_p9 = por %p176_p6, %p58_p1  ;;  %p182_p10 = scmp.eq.s32.totalorder %s737_s22, 1 }
  0x14   : > { %s1375_s27 = scalar_select %p1119_p8, 1, 0 }
  0x15   : > { %s1376_s28 = scalar_select %p1123_p9, 1, 0 }
  0x16   : > { %s1128_s29 = scalar_select %p49_p7, %s1021_s17, %s51_s24  }
  0x17   : > { %p1130_p11 = por %p182_p10, %p64_p3  ;;  %p795_p13 = scmp.lt.s32.totalorder %s1033_s20, 2 }
  0x18   : > { %1377 = sst [smem:[#allocation18_spill]] %s1128_s29  ;;  %s1362_s5 = sand.u32 1, %s1021_s17  }
  0x19   : > { %s1378_s30 = scalar_select %p1130_p11, 1, 0 }
  0x1a   : > { %s1139_s6 = sshll.u32 %s1362_s5, 3  ;;  %s1142_s7 = sshll.u32 %s1029_s19, 7 }
  0x1b   : > { %p1146_p0 = pnand %p795_p13, %p1111_p4  ;;  %s221_s9 = sand.u32 1, %s1033_s20  }
  0x1c   : > { %s1380_s1 = sld [smem:[#allocation19_spill]]  ;;  %s225_s13 = scalar_lea.vmem [#allocation8], %s1139_s6 }
  0x1d   : > { %s1379_s8 = scalar_select %p1146_p0, 1, 0 }
  0x1e   : > { %s233_s14 = sshll.u32 %s225_s13, 4  ;;  %s1162_s22 = scalar_lea.sflag [#allocation9], %s221_s9  ;;  %s1159_s14 = int_to_ptr.vmem [resolvable:$true] %s233_s14 }
  0x1f   : > { %p1168_p4 = pneg %p1146_p0 }
  0x22   : > { %s1155_s12 = scalar_lea.hbm %s1380_s1, %s1142_s7  ;;  %s862_s11 = scalar_lea.hbm %s1380_s1, 256 }
  0x23   : > { %s857_s24 = scalar_lea.hbm %s1155_s12, 128  ;;  %p863_p7 = scmp.lt.u32.totalorder %s1155_s12, %s1380_s1 }
  0x24   : > { %p858_p3 = scmp.ne.s32.totalorder %s1155_s12, %s857_s24  ;;  %p864_p10 = scmp.lt.u32.totalorder %s862_s11, %s857_s24 }
  0x25   : > { %p866_p12 = scmp.lt.u32.totalorder %s857_s24, %s1155_s12 }
  0x26   : > { %p860_p5 = pnand %p1168_p4, %p858_p3  ;;  %p865_p13 = por %p864_p10, %p863_p7 }
  0x28   : > { %p861_p6 = pneg %p860_p5  ;;  %p867_p1 = por %p866_p12, %p865_p13 }
  0x2a   : > { %p868_p2 = pnand %p867_p1, %p861_p6 }
  0x2c   : > { %871 = shalt.err (!%p868_p2)
}
  0x2d   : > { %s872_s9 = scalar_lea.vmem %s1159_s14, 128  ;;  %s1035_s26 = smov [#allocation8]  }
  0x2e   : > { %p873_p3 = scmp.ne.s32.totalorder %s1159_s14, %s872_s9  ;;  %s877_s10 = sshll.u32 %s1035_s26, 4  ;;  %s878_s10 = int_to_ptr.vmem [resolvable:$false] %s877_s10 }
  0x2f   : > { %s879_s5 = scalar_lea.vmem %s878_s10, 256  ;;  %p880_p9 = scmp.lt.s32.totalorder %s1159_s14, %s878_s10 }
  0x30   : > { %p875_p5 = pnand %p873_p3, %p1168_p4  ;;  %p881_p8 = scmp.lt.s32.totalorder %s879_s5, %s872_s9 }
  0x32   : > { %p876_p11 = pneg %p875_p5  ;;  %p882_p7 = por %p881_p8, %p880_p9 }
  0x34   : > { %p883_p10 = pnand %p882_p7, %p876_p11 }
  0x36   : > { %886 = shalt.err (!%p883_p10)
}
  0x37   : > { %787 = dma.hbm_to_vmem [thread:$0]  (!%p1146_p0), %s1155_s12, 128, %s1159_s14, %s1162_s22  }
  0x38   : > { %p1382_p12 = scmp.lt.s32.totalorder %s1033_s20, 3  ;;  %p1383_p1 = scmp.ge.s32.totalorder %s1033_s20, 1 }
  0x39   : > { %s1204_s9 = scalar_lea.hbm %s1357_s0, %s1142_s7  ;;  %s206_s26 = scalar_lea.vmem [#allocation5], %s1139_s6 }
  0x3a   : > { %p1196_p2 = pnand %p1383_p1, %p1382_p12  ;;  %s214_s10 = sshll.u32 %s206_s26, 4  ;;  %s1207_s10 = int_to_ptr.vmem [resolvable:$true] %s214_s10 }
  0x3b   : > { %s1213_s5 = scalar_lea.hbm %s1359_s2, %s1142_s7  ;;  %s1385_s1 = sand.u32 1, %s1021_s17  }
  0x3c   : > { %s1384_s24 = scalar_select %p1196_p2, 1, 0 }
  0x3d   : > { %s203_s23 = scalar_lea.sflag [#allocation6], %s1385_s1  ;;  %s887_s19 = scalar_lea.hbm %s1204_s9, 128 }
  0x3e   : > { %p888_p8 = scmp.ne.s32.totalorder %s1204_s9, %s887_s19  ;;  %s892_s29 = scalar_lea.hbm %s1357_s0, 256 }
  0x3f   : > { %p893_p6 = scmp.lt.u32.totalorder %s1204_s9, %s1357_s0  ;;  %p894_p13 = scmp.lt.u32.totalorder %s892_s29, %s887_s19 }
  0x40   : > { %p890_p9 = pnand %p888_p8, %p1168_p4  ;;  %p896_p5 = scmp.lt.u32.totalorder %s887_s19, %s1204_s9 }
  0x41   : > { %p895_p3 = por %p894_p13, %p893_p6 }
  0x42   : > { %p891_p11 = pneg %p890_p9 }
  0x43   : > { %p897_p7 = por %p896_p5, %p895_p3 }
  0x45   : > { %p898_p10 = pnand %p897_p7, %p891_p11 }
  0x47   : > { %901 = shalt.err (!%p898_p10)
}
  0x48   : > { %s902_s1 = scalar_lea.vmem %s1207_s10, 128  ;;  %s1036_s7 = smov [#allocation5]  }
  0x49   : > { %p903_p12 = scmp.ne.s32.totalorder %s1207_s10, %s902_s1  ;;  %s907_s12 = sshll.u32 %s1036_s7, 4  ;;  %s908_s12 = int_to_ptr.vmem [resolvable:$false] %s907_s12 }
  0x4a   : > { %s909_s20 = scalar_lea.vmem %s908_s12, 256  ;;  %p910_p9 = scmp.lt.s32.totalorder %s1207_s10, %s908_s12 }
  0x4b   : > { %p905_p1 = pnand %p903_p12, %p1168_p4  ;;  %p911_p2 = scmp.lt.s32.totalorder %s909_s20, %s902_s1 }
  0x4d   : > { %p906_p8 = pneg %p905_p1  ;;  %p912_p6 = por %p911_p2, %p910_p9 }
  0x4f   : > { %p913_p13 = pnand %p912_p6, %p906_p8 }
  0x51   : > { %916 = shalt.err (!%p913_p13)
}
  0x52   : > { %784 = dma.hbm_to_vmem [thread:$0]  (!%p1146_p0), %s1204_s9, 128, %s1207_s10, %s203_s23  }
  0x53   : > { %s244_s19 = scalar_lea.vmem [#allocation10], %s1139_s6  ;;  %s917_s14 = scalar_lea.hbm %s1213_s5, 128 }
  0x54   : > { %s252_s29 = sshll.u32 %s244_s19, 4  ;;  %p918_p11 = scmp.ne.s32.totalorder %s1213_s5, %s917_s14  ;;  %s253_s29 = int_to_ptr.vmem [resolvable:$true] %s252_s29 }
  0x55   : > { %s922_s26 = scalar_lea.hbm %s1359_s2, 256  ;;  %p923_p5 = scmp.lt.u32.totalorder %s1213_s5, %s1359_s2 }
  0x56   : > { %p920_p2 = pnand %p918_p11, %p1168_p4  ;;  %p924_p7 = scmp.lt.u32.totalorder %s922_s26, %s917_s14 }
  0x57   : > { %p926_p12 = scmp.lt.u32.totalorder %s917_s14, %s1213_s5 }
  0x58   : > { %p921_p3 = pneg %p920_p2  ;;  %p925_p10 = por %p924_p7, %p923_p5 }
  0x5a   : > { %p927_p1 = por %p926_p12, %p925_p10 }
  0x5c   : > { %p928_p8 = pnand %p927_p1, %p921_p3 }
  0x5e   : > { %931 = shalt.err (!%p928_p8)
}
  0x5f   : > { %s932_s23 = scalar_lea.vmem %s253_s29, 128  ;;  %s1037_s6 = smov [#allocation10]  }
  0x60   : > { %p933_p9 = scmp.ne.s32.totalorder %s253_s29, %s932_s23  ;;  %s937_s9 = sshll.u32 %s1037_s6, 4  ;;  %s938_s9 = int_to_ptr.vmem [resolvable:$false] %s937_s9 }
  0x61   : > { %s939_s10 = scalar_lea.vmem %s938_s9, 256  ;;  %p940_p11 = scmp.lt.s32.totalorder %s253_s29, %s938_s9 }
  0x62   : > { %p935_p6 = pnand %p933_p9, %p1168_p4  ;;  %p941_p2 = scmp.lt.s32.totalorder %s939_s10, %s932_s23 }
  0x64   : > { %p936_p13 = pneg %p935_p6  ;;  %p942_p0 = por %p941_p2, %p940_p11 }
  0x66   : > { %p943_p5 = pnand %p942_p0, %p936_p13 }
  0x68   : > { %946 = shalt.err (!%p943_p5)
}
  0x69   : > { %p1386_p7 = scmp.ne.s32.totalorder %s1379_s8, 0  ;;  %p1387_p3 = scmp.ne.s32.totalorder %s1384_s24, 0 }
  0x6a   : > { %s1260_s25 = sand.u32 (!%p1387_p3), 1, %s1017_s16   ;;  %p1388_p0 = scmp.ne.s32.totalorder (!%p1387_p3), %s1375_s27, 0 }
  0x6b   : > { %790 = dma.hbm_to_vmem [thread:$0]  (!%p1386_p7), %s1213_s5, 128, %s253_s29, %s1162_s22  }
  0x6c   : > { %274 = sbr.rel (%p1387_p3) target bundleno = 939 (0x3ab), region = 36  ;;  %s1263_s12 = sshll.u32 (!%p1387_p3), %s1260_s25, 3 }
  0x6d   : > { %s277_s20 = scalar_lea.sflag (!%p1387_p3), [#allocation6], %s1260_s25  ;;  %s280_s19 = scalar_lea.vmem (!%p1387_p3), [#allocation5], %s1263_s12 }
  0x73   : > { %1000 = dma.done.wait (%p1388_p0), %s277_s20, 128  }
  0x74   : > { %1002 = vsyncadd (%p1388_p0), %s277_s20, 4294967168  ;;  %s285_s8 = sand.u32 1, %s1099_s21   ;;  %s289_s24 = scalar_lea.vmem [#allocation8], %s1263_s12 }
  0x75   : > { %s286_s22 = scalar_lea.sflag [#allocation9], %s285_s8 }
  0x76   : > { %1004 = dma.done.wait (%p1388_p0), %s286_s22, 256  }
  0x77   : > { %1006 = vsyncadd (%p1388_p0), %s286_s22, 4294967040  ;;  %vm362_vm0 = vcmask 261120   ;;  %v1038_v0 = vmov 0.0   ;;  %vm1039_vm1 = vmmov 0   ;;  %v365_v1 = vld [vmem:[%s289_s24] sm:$0xff]  ;;  %v364_v2 = vld [vmem:[%s280_s19] sm:$0xff] }
  0x78   : > { %763 = vmatprep.subr.mxu0 %v1038_v0  ;;  %363 = vst.msk [vmem:[#allocation4] sm:$0xff] %vm362_vm0, %v1038_v0  ;;  %765 = vmatprep.mubr.msk.f32.mxu0 %vm1039_vm1, %v1038_v0  ;;  %v1040_v3 = vmov 0   ;;  %vm359_vm2 = vcmask 7168   ;;  %v1041_v4 = vmov -2.3819763e+38   ;;  %p343_p4 = scmp.lt.s32.totalorder %s1025_s18, 1 }
  0x79   : > { %768 = vmatprep.subr.mxu1 %v1038_v0  ;;  %770 = vmatprep.mubr.msk.f32.mxu1 %vm1039_vm1, %v1038_v0  ;;  %360 = vst.msk [vmem:[#allocation2] sm:$0xff] %vm359_vm2, %v1041_v4  ;;  %361 = vst.msk [vmem:[#allocation3] sm:$0xff] %vm359_vm2, %v1038_v0  ;;  %vm451_vm5 = vcmask 64512   ;;  %s298_s11 = scalar_lea.vmem [#allocation10], %s1263_s12  ;;  %s756_s13 = sshll.u32 %s1025_s18, 7 }
  0x7a   : > { %764 = vmatpush3.xpose.msk.msra.mxu0 %vm362_vm0, %v365_v1  ;;  %849 = vset.pattern.permute.xlu0 %v1040_v3  ;;  %s344_s21 = scalar_select %p343_p4, %s1025_s18, 1  ;;  %v483_v18 = vld [vmem:[%s298_s11] sm:$0xff] }
  0x7b   : > { %850 = vset.pattern.permute.xlu1 %v1040_v3  ;;  %769 = vmatpush3.msra.mxu1 %v483_v18  ;;  %s342_s26 = scalar_lea.vmem [#allocation11], %s1263_s12  ;;  %s1307_s6 = scalar_lea.hbm %s1361_s4, %s756_s13 }
  0x7c   : > { %s751_s27 = sshll.u32 %s344_s21, 1  ;;  %s590_s1 = sshll.u32 %s342_s26, 4  ;;  %s1309_s1 = int_to_ptr.vmem [resolvable:$true] %s590_s1 }
  0x7d   : > { %766 = vmatmul.mubr.msk.f32.vlgmr.msra.gmra.mrb[0].mxu0 %vm362_vm0, %v364_v2  ;;  %s352_s14 = scalar_lea.vmem %s1360_s3, %s751_s27  ;;  %s576_s9 = scalar_lea.sflag [#allocation7], %s1260_s25 }
  0x7e   : > { %v366_v5 = vld [vmem:[%s352_s14] sm:$0x3]  ;;  %s947_s10 = scalar_lea.vmem %s1309_s1, 128  ;;  %p1391_p12 = scmp.ne.s32.totalorder %s1376_s28, 0 }
  0x7f   : > { %vm367_vm3 = vnez %v366_v5  ;;  %v476_v34 = vld [vmem:[#allocation4] sm:$0xff]  ;;  %p948_p10 = scmp.ne.s32.totalorder %s1309_s1, %s947_s10  ;;  %s1042_s18 = smov [#allocation11]  }
  0x80   : > { %v446_v6 = vsel %vm367_vm3, 16843009, %v1040_v3  ;;  %v450_v14 = vld [vmem:[#allocation2] sm:$0xff]  ;;  %v468_v27 = vld [vmem:[#allocation3] sm:$0xff]  ;;  %s951_s12 = sshll.u32 %s1042_s18, 4  ;;  %s952_s12 = int_to_ptr.vmem [resolvable:$false] %s951_s12 }
  0x81   : > { %v447_v7 = vunpack.c.0.s8 %v446_v6  ;;  %p949_p1 = pnand %p948_p10, %p1391_p12  ;;  %s953_s20 = scalar_lea.vmem %s952_s12, 256 }
  0x82   : > { %p954_p9 = scmp.lt.s32.totalorder %s1309_s1, %s952_s12  ;;  %p955_p6 = scmp.lt.s32.totalorder %s953_s20, %s947_s10 }
  0x83   : > { %vm1287_vm4 = vcmp.ne.s32.totalorder %v447_v7, 0  ;;  %p950_p8 = pneg %p949_p1 }
  0x84   : > { %p956_p13 = por %p955_p6, %p954_p9 }
  0x86   : > { %p957_p11 = pnand %p956_p13, %p950_p8 }
 0x150   : > { %v441_v8 = vpop.f32.mrb[0].mxu0 }
 0x151   : > { %v445_v10 = vmul.f32 0.17677669, %v441_v8  ;;  %v767_v11 = vpop.f32.mrb[1].mxu0 }
 0x153   : > { %v449_v12 = vsel %vm1287_vm4, -2.3819763e+38, %v445_v10 }
 0x154   : > { %v452_v13 = vsel %vm451_vm5, %v449_v12, -inf }
 0x155   : > { %453 = vmax.xlane.f32.xlu0 %v452_v13 }
 0x1e2   : > { %v454_v15 = vpop.xlane.xlu0 %453 }
 0x1e3   : > { %v455_v16 = vmax.f32 %v450_v14, %v454_v15 }
 0x1e5   : > { %v456_v17 = vsub.f32 %v450_v14, %v455_v16  ;;  %559 = vst.msk [vmem:[#allocation2] sm:$0xff] %vm359_vm2, %v455_v16  ;;  %461 = vperm.xlu0 %849, %v455_v16  }
 0x1e7   : > { %v457_v25 = vmul.f32 1.442695, %v456_v17 }
 0x264   : > { %v462_v19 = vpop.permute.xlu0 %461 }
 0x265   : > { %v464_v20 = vsub.f32 %v449_v12, %v462_v19 }
 0x267   : > { %v465_v21 = vmul.f32 1.442695, %v464_v20 }
 0x269   : > { %851 = vpow2.f32 %v465_v21 }
 0x26a   : > { %853 = vpow2.f32 %v457_v25 }
 0x273   : > { %v852_v22 = vpop.eup %851 }
 0x274   : > { %v467_v23 = vsel %vm1287_vm4, 0.0, %v852_v22  ;;  %v854_v26 = vpop.eup %853 }
 0x275   : > { %771 = vmatmul.mubr.msk.f32.vlgmr.msra.gmra.mrb[0].mxu1 %vm451_vm5, %v467_v23  ;;  %v470_v24 = vsel %vm451_vm5, %v467_v23, 0.0  ;;  %v469_v28 = vmul.f32 %v854_v26, %v468_v27 }
 0x276   : > { %471 = vadd.xlane.f32.xlu1 %v470_v24 }
 0x287   : > { %479 = vperm.xlu1 %850, %v854_v26  }
 0x303   : > { %v472_v29 = vpop.xlane.xlu1 %471 }
 0x304   : > { %v473_v30 = vadd.f32 %v472_v29, %v469_v28 }
 0x306   : > { %475 = vst.msk [vmem:[#allocation3] sm:$0xff] %vm359_vm2, %v473_v30 }
 0x307   : > { %v480_v35 = vpop.permute.xlu1 %479 }
 0x308   : > { %v482_v36 = vmul.f32 %v480_v35, %v476_v34 }
 0x30d   : > { %v563_v31 = vld [vmem:[#allocation3] sm:$0xff] }
 0x30e   : > { %vm564_vm6 = vcmp.eq.f32.partialorder %v563_v31, 0.0 }
 0x30f   : > { %v565_v32 = vsel %vm564_vm6, 1.0, %v563_v31 }
 0x310   : > { %855 = vrcp.f32 %v565_v32 }
 0x31a   : > { %v856_v33 = vpop.eup %855 }
 0x31b   : > { %570 = vperm.xlu1 %850, %v856_v33  }
 0x348   : > { %v553_v37 = vpop.f32.mrb[0].mxu1 }
 0x349   : > { %v557_v38 = vadd.f32 %v553_v37, %v482_v36  ;;  %v772_v39 = vpop.f32.mrb[1].mxu1 }
 0x34b   : > { %558 = vst.msk [vmem:[#allocation4] sm:$0xff] %vm362_vm0, %v557_v38 }
 0x352   : > { %v566_v40 = vld [vmem:[#allocation4] sm:$0xff] }
 0x39a   : > { %v571_v41 = vpop.permute.xlu1 %570 }
 0x39b   : > { %v573_v42 = vmul.f32 %v571_v41, %v566_v40 }
 0x39d   : > { %574 = vst.msk [vmem:[%s342_s26] sm:$0xff] %vm362_vm0, %v573_v42 }
 0x39e   : > { %960 = shalt.err (!%p957_p11)
}
 0x39f   : > { %s961_s25 = scalar_lea.hbm %s1307_s6, 128  ;;  %s965_s22 = scalar_lea.hbm %s1361_s4, 256 }
 0x3a0   : > { %p962_p2 = scmp.ne.s32.totalorder %s1307_s6, %s961_s25  ;;  %p966_p3 = scmp.lt.u32.totalorder %s1307_s6, %s1361_s4 }
 0x3a1   : > { %p967_p0 = scmp.lt.u32.totalorder %s965_s22, %s961_s25  ;;  %p969_p10 = scmp.lt.u32.totalorder %s961_s25, %s1307_s6 }
 0x3a2   : > { %p963_p5 = pnand %p962_p2, %p1391_p12 }
 0x3a3   : > { %p968_p4 = por %p967_p0, %p966_p3 }
 0x3a4   : > { %p964_p7 = pneg %p963_p5 }
 0x3a5   : > { %p970_p1 = por %p969_p10, %p968_p4 }
 0x3a7   : > { %p971_p8 = pnand %p970_p1, %p964_p7 }
 0x3a9   : > { %974 = shalt.err (!%p971_p8)
}
 0x3aa   : > { %779 = dma.vmem_to_hbm [thread:$0]  (%p1391_p12), %s1309_s1, 128, %s1307_s6, %s576_s9  }
 0x3ab PF: > { %s1392_s27 = sld [smem:[#allocation16_spill]]  ;;  %s602_s5 = sand.u32 1, %s1013_s15  }
 0x3ac   : > { %p1393_p9 = scmp.ne.s32.totalorder %s1378_s30, 0  ;;  %s603_s29 = scalar_lea.sflag [#allocation7], %s602_s5 }
 0x3b1   : > { %p1394_p6 = scmp.ge.s32.totalorder %s1392_s27, 2 }
 0x3b3   : > { %p792_p13 = pnand %p1394_p6, %p1393_p9 }
 0x3b5   : > { %1008 = dma.done.wait (!%p792_p13), %s603_s29, 128  }
 0x3b6   : > { %1010 = vsyncadd (!%p792_p13), %s603_s29, 4294967168  ;;  %s23_s20 = sadd.s32 1, %s1392_s27   ;;  %s1395_s28 = sld [smem:[#allocation18_spill]] }
 0x3b7   : > { %p20_p11 = scmp.ge.s32.totalorder %s23_s20, 4   ;;  %s1396_s18 = sld [smem:[#allocation15_spill]] }
 0x3b8   : > { %s1397_s19 = sld [smem:[#allocation17_spill]]  ;;  %s1398_s15 = smov %s1017_s16 }
 0x3b9   : > { %s1399_s16 = smov %s1021_s17  ;;  %22 = sbr.rel (!%p20_p11) target bundleno = 10 (0xa), region = 116 }
 0x3bc   : > { %s1400_s17 = smov %s1395_s28 }
 0x3c0   :  { %608 = vsyncpa [#allocation6], 1 }
 0x3c1   :  { %610 = vsyncpa [#allocation6 + $0x1], 1 }
 0x3c2   :  { %611 = vsyncpa [#allocation9], 1 }
 0x3c3   :  { %613 = vsyncpa [#allocation9 + $0x1], 1 }
 0x3c4   :  { %614 = vsyncpa [#allocation7], 1 }
 0x3c5   :  { %616 = vsyncpa [#allocation7 + $0x1], 1 }

</bundles_post_ra>
